<compile_context>
chip_gen: v6e
topology: v6e:2x2x1
jax: 0.10.0
libtpu: 0.0.40
codegen_flags: <defaults>
</compile_context>

<pallas_src>
import jax
import jax.numpy as jnp
from jax.experimental import pallas as pl
from jax.experimental.pallas import tpu as pltpu


def channel_attention_kernel(w1_ref, w2_ref, x_ref, o_ref):
    # w1_ref: (C//16, C)     first 1x1 conv weight (PyTorch OI layout, squeezed)
    # w2_ref: (C, C//16)     second 1x1 conv weight
    # x_ref : (B_t, C, T_HW) channels (sublane) x pixels (lane)
    # o_ref : (B_t, C, T_HW)
    w1 = w1_ref[...]
    w2 = w2_ref[...]
    # B_t == 1 whenever HW >= 128; the static unroll only exists for tiny-HW
    # shapes where batching images per grid step amortizes per-step overhead.
    for b in range(x_ref.shape[0]):
        x = x_ref[b]
        h = jnp.maximum(
            jnp.dot(w1, x, preferred_element_type=jnp.float32), 0.0
        )
        # max_out + avg_out == 2*fc(x): scale the small (hidden x T) intermediate
        # instead of adding the full (C x T) result to itself.
        y = jnp.dot(w2, 2.0 * h, preferred_element_type=jnp.float32)
        o_ref[b] = jax.nn.sigmoid(y).astype(o_ref.dtype)


def _vmem_limit_bytes():
    """~3/4 of physical VMEM: 96 MiB on v5e/v6e (128 MiB), 48 MiB on v7x (64 MiB)."""
    cap = 128 * 1024 * 1024
    try:
        info = pltpu.get_tpu_info()
        cap = int(getattr(info, "vmem_capacity_bytes", cap))
    except Exception:
        pass
    return (cap * 3) // 4


def _pick_hw_tile(hw, c, itemsize, budget_bytes):
    """Largest lane-dim tile whose double-buffered x+out blocks fit the budget.

    Block last dim must be a multiple of 128 or equal to the full dim.
    """
    if hw <= 128:
        return hw  # full dim is always a legal block extent
    per_lane = 4 * c * itemsize  # (x + out) blocks, each double-buffered
    max_t = max(128, (budget_bytes // per_lane) // 128 * 128)
    if hw <= max_t:
        return hw  # whole pixel axis fits in one block
    t = max_t
    if hw % 128 == 0:
        # Prefer an even divisor of hw only if it doesn't shrink the tile
        # below 1024 lanes; otherwise keep max_t and take one padded tail block.
        d = t
        while d >= 1024 and hw % d != 0:
            d -= 128
        if d >= 1024 and hw % d == 0:
            t = d
    return t


def _pick_batch_tile(n, hw):
    """Images per grid step: >1 only in the tiny-HW regime (HW < 128)."""
    if hw >= 128:
        return 1
    b_t = min(n, 8)
    while n % b_t:  # prefer a divisor of N to avoid a padded batch tail
        b_t -= 1
    return b_t


def channel_attention(x_nchw, w1_oi, w2_oi):
    """x_nchw: (N, C, H, W); w1_oi: (C//16, C); w2_oi: (C, C//16) (PyTorch OI)."""
    N, C, H, W = x_nchw.shape
    hidden = w1_oi.shape[0]
    HW = H * W

    # Free reshape: NCHW and (N, C, HW) share the same contiguous HBM layout.
    x3d = x_nchw.reshape(N, C, HW)

    vmem_limit = _vmem_limit_bytes()
    # Leave half the scoped VMEM for weight double-buffers, f32 intermediates
    # and Mosaic internal scratch.
    tile_budget = vmem_limit // 2
    t_hw = _pick_hw_tile(HW, C, x_nchw.dtype.itemsize, tile_budget)
    b_t = _pick_batch_tile(N, HW)
    grid = (pl.cdiv(N, b_t), pl.cdiv(HW, t_hw))

    cost = pl.CostEstimate(
        flops=4 * N * HW * C * hidden,          # two (C x hidden) matmuls/pixel
        transcendentals=N * HW * C,             # sigmoid
        bytes_accessed=2 * N * HW * C * x_nchw.dtype.itemsize
        + 2 * C * hidden * w1_oi.dtype.itemsize,
    )

    out3d = pl.pallas_call(
        channel_attention_kernel,
        out_shape=jax.ShapeDtypeStruct((N, C, HW), x_nchw.dtype),
        grid_spec=pltpu.PrefetchScalarGridSpec(
            num_scalar_prefetch=0,
            grid=grid,
            in_specs=[
                # Weights: constant index_map -> loaded once, stay resident.
                pl.BlockSpec((hidden, C), lambda n, i: (0, 0)),
                pl.BlockSpec((C, hidden), lambda n, i: (0, 0)),
                # x: b_t images, C full, tiled along the pixel (lane) axis.
                pl.BlockSpec((b_t, C, t_hw), lambda n, i: (n, 0, i)),
            ],
            out_specs=pl.BlockSpec((b_t, C, t_hw), lambda n, i: (n, 0, i)),
        ),
        compiler_params=pltpu.CompilerParams(
            # Every output block is independent -> both axes parallel
            # (sharded across the 2 TensorCores on v7x; neutral on v5e/v6e).
            dimension_semantics=("parallel", "parallel"),
            vmem_limit_bytes=int(vmem_limit),
        ),
        cost_estimate=cost,
    )(w1_oi, w2_oi, x3d)

    return out3d.reshape(N, C, H, W)


def _reference(x_nchw, w1_oi, w2_oi):
    """Pure-JAX reference of the PyTorch forward pass (NCHW 1x1 convs)."""
    h = jnp.einsum("nchw,oc->nohw", x_nchw, w1_oi)
    h = jnp.maximum(h, 0.0)
    y = jnp.einsum("nchw,oc->nohw", h, w2_oi)
    return jax.nn.sigmoid(y + y)


if __name__ == "__main__":
    key = jax.random.PRNGKey(0)

    # Case 1: small-HW regime (HW = 64 < 128) -> multi-image grid steps.
    N, C, H, W = 2, 32, 8, 8
    hidden = C // 16  # inplanes must be >= 16 so inplanes // 16 >= 1
    kx, k1, k2, kx2 = jax.random.split(key, 4)
    x = jax.random.normal(kx, (N, C, H, W), dtype=jnp.float32)
    # PyTorch Conv2d weight layout is (out, in, 1, 1); we keep the squeezed (out, in).
    w1_oi = jax.random.normal(k1, (hidden, C), dtype=jnp.float32) * (1.0 / jnp.sqrt(C))
    w2_oi = jax.random.normal(k2, (C, hidden), dtype=jnp.float32) * (1.0 / jnp.sqrt(hidden))

    out = jax.block_until_ready(channel_attention(x, w1_oi, w2_oi))
    ref = _reference(x, w1_oi, w2_oi)
    assert out.shape == (N, C, H, W), out.shape
    assert jnp.allclose(out, ref, atol=1e-5, rtol=1e-5), "mismatch vs reference (small HW)"

    # Case 2: lane-dense regime (HW = 256 >= 128) -> one image per step, full-HW tile.
    N2, H2, W2 = 1, 16, 16
    x2 = jax.random.normal(kx2, (N2, C, H2, W2), dtype=jnp.float32)
    out2 = jax.block_until_ready(channel_attention(x2, w1_oi, w2_oi))
    ref2 = _reference(x2, w1_oi, w2_oi)
    assert out2.shape == (N2, C, H2, W2), out2.shape
    assert jnp.allclose(out2, ref2, atol=1e-5, rtol=1e-5), "mismatch vs reference (large HW)"

    print("KERNEL_OK")
</pallas_src>

<mosaic_0001>
module attributes {stable_mosaic.version = 11 : i64} {
  func.func @channel_attention_kernel(%arg0: i32, %arg1: i32, %arg2: memref<2x32xf32, #tpu.memory_space<vmem>>, %arg3: memref<32x2xf32, #tpu.memory_space<vmem>>, %arg4: memref<2x32x64xf32, #tpu.memory_space<vmem>>, %arg5: memref<2x32x64xf32, #tpu.memory_space<vmem>>) attributes {dimension_semantics = [#tpu.dimension_semantics<parallel>, #tpu.dimension_semantics<parallel>], iteration_bounds = array<i64: 1, 1>, scalar_prefetch = 0 : i64, scratch_operands = 0 : i64, tpu.core_type = #tpu.core_type<tc>, window_params = [{pipeline_mode = #tpu.pipeline_mode<synchronous>, transform_indices = @transform_0, window_bounds = array<i64: 2, 32>}, {pipeline_mode = #tpu.pipeline_mode<synchronous>, transform_indices = @transform_1, window_bounds = array<i64: 32, 2>}, {transform_indices = @transform_2, window_bounds = array<i64: 2, 32, 64>}, {transform_indices = @transform_3, window_bounds = array<i64: 2, 32, 64>}]} {
    %c0 = arith.constant 0 : index
    %c0_0 = arith.constant 0 : index
    %0 = vector.load %arg2[%c0, %c0_0] : memref<2x32xf32, #tpu.memory_space<vmem>>, vector<2x32xf32>
    %c0_1 = arith.constant 0 : index
    %c0_2 = arith.constant 0 : index
    %1 = vector.load %arg3[%c0_1, %c0_2] : memref<32x2xf32, #tpu.memory_space<vmem>>, vector<32x2xf32>
    %c0_3 = arith.constant 0 : index
    %c0_4 = arith.constant 0 : index
    %c0_5 = arith.constant 0 : index
    %2 = vector.load %arg4[%c0_3, %c0_4, %c0_5] : memref<2x32x64xf32, #tpu.memory_space<vmem>>, vector<1x32x64xf32>
    %3 = vector.shape_cast %2 : vector<1x32x64xf32> to vector<32x64xf32>
    %cst = arith.constant dense<0.000000e+00> : vector<2x64xf32>
    %4 = tpu.matmul %0, %3, %cst {dimension_numbers = #tpu.dot_dimension_numbers<[1], [0], [0], [1], [0, 0, 1, 1], [], []>} : vector<2x32xf32>, vector<32x64xf32>, vector<2x64xf32> -> vector<2x64xf32>
    %cst_6 = arith.constant 0.000000e+00 : f32
    %5 = vector.broadcast %cst_6 : f32 to vector<2x64xf32>
    %6 = arith.maximumf %4, %5 : vector<2x64xf32>
    %cst_7 = arith.constant 2.000000e+00 : f32
    %7 = vector.broadcast %cst_7 : f32 to vector<2x64xf32>
    %8 = arith.mulf %7, %6 : vector<2x64xf32>
    %cst_8 = arith.constant dense<0.000000e+00> : vector<32x64xf32>
    %9 = tpu.matmul %1, %8, %cst_8 {dimension_numbers = #tpu.dot_dimension_numbers<[1], [0], [0], [1], [0, 0, 1, 1], [], []>} : vector<32x2xf32>, vector<2x64xf32>, vector<32x64xf32> -> vector<32x64xf32>
    %10 = arith.negf %9 : vector<32x64xf32>
    %11 = math.exp %10 : vector<32x64xf32>
    %cst_9 = arith.constant 1.000000e+00 : f32
    %12 = vector.broadcast %cst_9 : f32 to vector<32x64xf32>
    %13 = arith.addf %12, %11 : vector<32x64xf32>
    %14 = arith.divf %12, %13 : vector<32x64xf32>
    %c0_10 = arith.constant 0 : index
    %c0_11 = arith.constant 0 : index
    %c0_12 = arith.constant 0 : index
    %15 = vector.load %arg5[%c0_10, %c0_11, %c0_12] : memref<2x32x64xf32, #tpu.memory_space<vmem>>, vector<1x32x64xf32>
    %16 = vector.shape_cast %15 : vector<1x32x64xf32> to vector<32x64xf32>
    %17 = vector.shape_cast %14 : vector<32x64xf32> to vector<1x32x64xf32>
    tpu.vector_store %arg5[%c0_10, %c0_11, %c0_12], %17 {strides = array<i32>} : memref<2x32x64xf32, #tpu.memory_space<vmem>>, vector<1x32x64xf32>,
    %c1 = arith.constant 1 : index
    %c0_13 = arith.constant 0 : index
    %c0_14 = arith.constant 0 : index
    %18 = vector.load %arg4[%c1, %c0_13, %c0_14] : memref<2x32x64xf32, #tpu.memory_space<vmem>>, vector<1x32x64xf32>
    %19 = vector.shape_cast %18 : vector<1x32x64xf32> to vector<32x64xf32>
    %cst_15 = arith.constant dense<0.000000e+00> : vector<2x64xf32>
    %20 = tpu.matmul %0, %19, %cst_15 {dimension_numbers = #tpu.dot_dimension_numbers<[1], [0], [0], [1], [0, 0, 1, 1], [], []>} : vector<2x32xf32>, vector<32x64xf32>, vector<2x64xf32> -> vector<2x64xf32>
    %cst_16 = arith.constant 0.000000e+00 : f32
    %21 = vector.broadcast %cst_16 : f32 to vector<2x64xf32>
    %22 = arith.maximumf %20, %21 : vector<2x64xf32>
    %cst_17 = arith.constant 2.000000e+00 : f32
    %23 = vector.broadcast %cst_17 : f32 to vector<2x64xf32>
    %24 = arith.mulf %23, %22 : vector<2x64xf32>
    %cst_18 = arith.constant dense<0.000000e+00> : vector<32x64xf32>
    %25 = tpu.matmul %1, %24, %cst_18 {dimension_numbers = #tpu.dot_dimension_numbers<[1], [0], [0], [1], [0, 0, 1, 1], [], []>} : vector<32x2xf32>, vector<2x64xf32>, vector<32x64xf32> -> vector<32x64xf32>
    %26 = arith.negf %25 : vector<32x64xf32>
    %27 = math.exp %26 : vector<32x64xf32>
    %cst_19 = arith.constant 1.000000e+00 : f32
    %28 = vector.broadcast %cst_19 : f32 to vector<32x64xf32>
    %29 = arith.addf %28, %27 : vector<32x64xf32>
    %30 = arith.divf %28, %29 : vector<32x64xf32>
    %c1_20 = arith.constant 1 : index
    %c0_21 = arith.constant 0 : index
    %c0_22 = arith.constant 0 : index
    %31 = vector.load %arg5[%c1_20, %c0_21, %c0_22] : memref<2x32x64xf32, #tpu.memory_space<vmem>>, vector<1x32x64xf32>
    %32 = vector.shape_cast %31 : vector<1x32x64xf32> to vector<32x64xf32>
    %33 = vector.shape_cast %30 : vector<32x64xf32> to vector<1x32x64xf32>
    tpu.vector_store %arg5[%c1_20, %c0_21, %c0_22], %33 {strides = array<i32>} : memref<2x32x64xf32, #tpu.memory_space<vmem>>, vector<1x32x64xf32>,
    return
  }
  func.func @transform_0(%arg0: i32, %arg1: i32) -> (i32, i32) {
    %c0_i32 = arith.constant 0 : i32
    %c0_i32_0 = arith.constant 0 : i32
    %c0_i32_1 = arith.constant 0 : i32
    return %c0_i32, %c0_i32_0 : i32, i32
  }
  func.func @transform_1(%arg0: i32, %arg1: i32) -> (i32, i32) {
    %c0_i32 = arith.constant 0 : i32
    %c0_i32_0 = arith.constant 0 : i32
    %c0_i32_1 = arith.constant 0 : i32
    return %c0_i32, %c0_i32_0 : i32, i32
  }
  func.func @transform_2(%arg0: i32, %arg1: i32) -> (i32, i32, i32) {
    %c0_i32 = arith.constant 0 : i32
    %c0_i32_0 = arith.constant 0 : i32
    return %arg0, %c0_i32, %arg1 : i32, i32, i32
  }
  func.func @transform_3(%arg0: i32, %arg1: i32) -> (i32, i32, i32) {
    %c0_i32 = arith.constant 0 : i32
    %c0_i32_0 = arith.constant 0 : i32
    return %arg0, %c0_i32, %arg1 : i32, i32, i32
  }
}

</mosaic_0001>

<bundles_post_ra>
// kernel: tpu_custom_call.1
= control target key start
LH: loop header
LB: loop body
LE: loop exit
PB: predicated region body
PF: predicated region fallthrough
CT: control target
= control target key end

     0   :  { %8 = vsyncpa [#allocation3], 0  ;;  %s697_s0 = inlined_call_operand.vmem [shape: f32[2,32], index: 0, kind: input, shape index: {}]   ;;  %s698_s1 = inlined_call_operand.vmem [shape: f32[32,2], index: 1, kind: input, shape index: {}]   ;;  %s699_s2 = inlined_call_operand.hbm [shape: f32[2,32,64], index: 2, kind: input, shape index: {}]   ;;  %s700_s3 = inlined_call_operand.hbm [shape: f32[2,32,64], index: 3, kind: output, shape index: {}]  }
   0x1   :  { %9 = vsyncpa [#allocation4], 0  ;;  %s618_s12 = smov [#allocation2]  }
   0x2   :  { %s19_s13 = sshll.u32 %s618_s12, 4  ;;  %s20_s13 = int_to_ptr.vmem [resolvable:$true] %s19_s13 }
   0x3   :  { %s582_s14 = scalar_lea.vmem %s20_s13, 1024  ;;  %p587_p1 = scmp.lt.s32.totalorder %s20_s13, %s20_s13 }
   0x4   :  { %p583_p0 = scmp.ne.s32.totalorder %s20_s13, %s582_s14  ;;  %p588_p2 = scmp.lt.s32.totalorder %s582_s14, %s582_s14 }
   0x6   :  { %p589_p3 = por %p588_p2, %p587_p1 }
   0x8   :  { %p590_p4 = pnand %p589_p3, %p583_p0 }
   0xa   :  { %593 = shalt.err (!%p590_p4)
}
   0xb   :  { %s619_s15 = smov 128   ;;  %s620_s16 = smov 8  }
   0xc   :  { %25 = dma.hbm_to_vmem [thread:$0]  %s699_s2, 1024, %s20_s13, [#allocation3], %s619_s15, %s619_s15, %s620_s16  }
   0xd   :  { %614 = dma.done.wait [#allocation3], 1024  }
   0xe   :  { %615 = vsyncadd [#allocation3], 4294966272  ;;  %v621_v0 = vmov 0.0   ;;  %vm622_vm0 = vmmov 0   ;;  %v37_v1 = vld [vmem:[#allocation2 + $0x18] sm:$0xff]  ;;  %v36_v2 = vld [vmem:[#allocation2 + $0x10] sm:$0xff] }
   0xf   :  { %496 = vmatprep.subr.mxu0 %v621_v0  ;;  %504 = vmatprep.mubr.msk.f32.mxu0 %vm622_vm0, %v621_v0  ;;  %v35_v3 = vld [vmem:[#allocation2 + $0x8] sm:$0xff]  ;;  %v34_v4 = vld [vmem:[#allocation2] sm:$0xff]  ;;  %vm38_vm1 = vcmask 261120   ;;  %vm114_vm2 = vcmask 15360   ;;  %vm127_vm3 = vcmask 1041408   ;;  %v249_v12 = vld [vmem:[#allocation2 + $0x38] sm:$0xff] }
  0x10   :  { %497 = vmatpush3.msra.mxu0 %v37_v1  ;;  %v29_v5 = vld [vmem:[%s697_s0] sm:$0x3]  ;;  %v31_v11 = vld [vmem:[%s698_s1 + $0x8] sm:$0xff]  ;;  %v32_v13 = vld [vmem:[%s698_s1 + $0x10] sm:$0xff]  ;;  %vm240_vm4 = vcmask 523264  }
  0x11   :  { %498 = vmatprep.subr.mxu0 %v621_v0  ;;  %v30_v6 = vld [vmem:[%s698_s1] sm:$0xff]  ;;  %v248_v14 = vld [vmem:[#allocation2 + $0x30] sm:$0xff]  ;;  %v33_v15 = vld [vmem:[%s698_s1 + $0x18] sm:$0xff]  ;;  %s623_s1 = smov [#allocation5]  }
  0x12   :  { %499 = vmatpush3.msra.mxu0 %v36_v2  ;;  %509 = vmatprep.mubr.msk.f32.mxu1 %vm114_vm2, %v30_v6  ;;  %v247_v16 = vld [vmem:[#allocation2 + $0x28] sm:$0xff]  ;;  %v246_v17 = vld [vmem:[#allocation2 + $0x20] sm:$0xff]  ;;  %s444_s27 = sshll.u32 %s623_s1, 4  ;;  %s445_s27 = int_to_ptr.vmem [resolvable:$true] %s444_s27 }
  0x13   :  { %500 = vmatprep.subr.mxu0 %v621_v0  ;;  %s594_s28 = scalar_lea.vmem %s445_s27, 1024  ;;  %p599_p6 = scmp.lt.s32.totalorder %s445_s27, %s445_s27 }
  0x14   :  { %501 = vmatpush3.msra.mxu0 %v35_v3  ;;  %p595_p5 = scmp.ne.s32.totalorder %s445_s27, %s594_s28  ;;  %p600_p7 = scmp.lt.s32.totalorder %s594_s28, %s594_s28 }
  0x15   :  { %502 = vmatprep.subr.mxu0 %v621_v0 }
  0x16   :  { %503 = vmatpush3.msra.mxu0 %v34_v4  ;;  %p601_p8 = por %p600_p7, %p599_p6 }
  0x17   :  { %505 = vmatmul.mubr.msk.f32.vlgmr.msra.gmra.mxu0 %vm38_vm1, %v29_v5 }
  0x18   :  { %528 = vmatprep.mubr.msk.f32.mxu0 %vm114_vm2, %v30_v6  ;;  %p602_p9 = pnand %p601_p8, %p595_p5 }
  0xd7   :  { %v108_v7 = vpop.f32.mrf.mxu0 }
  0xd8   :  { %v112_v8 = vmax.f32 %v108_v7, 0.0 }
  0xd9   :  { %v506_v9 = vpop.f32.mrf.mxu0 }
  0xda   :  { %v113_v10 = vmul.f32 2.0, %v112_v8 }
  0xdc   :  { %507 = vmatprep.subr.msk.mxu1 %vm127_vm3, %v113_v10 }
  0xdd   :  { %508 = vmatpush3.msk.msra.mxu1 %vm127_vm3, %v113_v10 }
  0xde   :  { %510 = vmatmul.mubr.msk.f32.vlgmr.msra.gmra.mxu1 %vm114_vm2, %v31_v11  ;;  %515 = vmatprep.subr.mxu1 %v621_v0 }
  0xdf   :  { %516 = vmatpush3.msra.mxu1 %v249_v12  ;;  %512 = vmatprep.mubr.msk.f32.mxu1 %vm114_vm2, %v32_v13 }
  0xe0   :  { %517 = vmatprep.subr.mxu1 %v621_v0 }
  0xe1   :  { %518 = vmatpush3.msra.mxu1 %v248_v14 }
  0xe2   :  { %513 = vmatmul.mubr.msk.f32.gmra.mxu1 %vm114_vm2, %v33_v15  ;;  %519 = vmatprep.subr.mxu1 %v621_v0 }
  0xe3   :  { %520 = vmatpush3.msra.mxu1 %v247_v16  ;;  %523 = vmatprep.mubr.msk.f32.mxu1 %vm622_vm0, %v621_v0 }
  0xe4   :  { %521 = vmatprep.subr.mxu1 %v621_v0 }
  0xe5   :  { %522 = vmatpush3.msra.mxu1 %v246_v17 }
  0xe6   :  { %524 = vmatmul.mubr.msk.f32.vlgmr.msra.gmra.mxu1 %vm38_vm1, %v29_v5 }
  0xe7   :  { %531 = vmatprep.mubr.msk.f32.mxu1 %vm114_vm2, %v32_v13 }
 0x19e   :  { %v511_v18 = vpop.f32.mrf.mxu1 }
 0x19f   :  { %v463_v19 = vmul.f32 -1.442695, %v511_v18 }
 0x1a0   :  { %v197_v20 = vpop.f32.mrf.mxu1 }
 0x1a1   :  { %542 = vpow2.f32 %v463_v19  ;;  %v462_v21 = vmul.f32 -1.442695, %v197_v20 }
 0x1a2   :  { %v514_v22 = vpop.f32.mrf.mxu1 }
 0x1a3   :  { %544 = vpow2.f32 %v462_v21  ;;  %v465_v23 = vmul.f32 -1.442695, %v514_v22 }
 0x1a4   :  { %v207_v24 = vpop.f32.mrf.mxu1 }
 0x1a5   :  { %546 = vpow2.f32 %v465_v23  ;;  %v464_v25 = vmul.f32 -1.442695, %v207_v24 }
 0x1a6   :  { %v316_v26 = vpop.f32.mrf.mxu1 }
 0x1a7   :  { %548 = vpow2.f32 %v464_v25  ;;  %v320_v27 = vmax.f32 %v316_v26, 0.0 }
 0x1a8   :  { %v525_v28 = vpop.f32.mrf.mxu1 }
 0x1a9   :  { %v321_v29 = vmul.f32 2.0, %v320_v27 }
 0x1ab   :  { %526 = vmatprep.subr.msk.mxu0 %vm127_vm3, %v321_v29  ;;  %534 = vmatprep.subr.msk.mxu1 %vm127_vm3, %v321_v29 }
 0x1ac   :  { %527 = vmatpush3.msk.msra.mxu0 %vm127_vm3, %v321_v29  ;;  %535 = vmatpush3.msk.msra.mxu1 %vm127_vm3, %v321_v29 }
 0x1ad   :  { %529 = vmatmul.mubr.msk.f32.vlgmr.msra.gmra.mxu0 %vm114_vm2, %v31_v11  ;;  %532 = vmatmul.mubr.msk.f32.vlgmr.msra.gmra.mxu1 %vm114_vm2, %v33_v15 }
 0x1ae   :  { %v543_v30 = vpop.eup %542 }
 0x1af   :  { %v229_v31 = vadd.f32 1.0, %v543_v30 }
 0x1b0   :  { %v545_v32 = vpop.eup %544 }
 0x1b1   :  { %550 = vrcp.f32 %v229_v31  ;;  %v228_v33 = vadd.f32 1.0, %v545_v32 }
 0x1b2   :  { %v547_v34 = vpop.eup %546 }
 0x1b3   :  { %552 = vrcp.f32 %v228_v33  ;;  %v231_v35 = vadd.f32 1.0, %v547_v34 }
 0x1b4   :  { %v549_v36 = vpop.eup %548 }
 0x1b5   :  { %554 = vrcp.f32 %v231_v35  ;;  %v230_v37 = vadd.f32 1.0, %v549_v36 }
 0x1b7   :  { %556 = vrcp.f32 %v230_v37 }
 0x1be   :  { %v551_v38 = vpop.eup %550 }
 0x1bf   :  { %242 = vst.msk [vmem:[#allocation5 + $0x8] sm:$0xff] %vm240_vm4, %v551_v38 }
 0x1c0   :  { %v553_v39 = vpop.eup %552 }
 0x1c1   :  { %241 = vst.msk [vmem:[#allocation5] sm:$0xff] %vm240_vm4, %v553_v39 }
 0x1c2   :  { %v555_v40 = vpop.eup %554 }
 0x1c3   :  { %244 = vst.msk [vmem:[#allocation5 + $0x18] sm:$0xff] %vm240_vm4, %v555_v40 }
 0x1c4   :  { %v557_v41 = vpop.eup %556 }
 0x1c5   :  { %243 = vst.msk [vmem:[#allocation5 + $0x10] sm:$0xff] %vm240_vm4, %v557_v41 }
 0x26d   :  { %v530_v42 = vpop.f32.mrf.mxu0  ;;  %v533_v43 = vpop.f32.mrf.mxu1 }
 0x26e   :  { %v473_v44 = vmul.f32 -1.442695, %v530_v42  ;;  %v475_v45 = vmul.f32 -1.442695, %v533_v43 }
 0x26f   :  { %v391_v46 = vpop.f32.mrf.mxu0  ;;  %v401_v47 = vpop.f32.mrf.mxu1 }
 0x270   :  { %558 = vpow2.f32 %v473_v44  ;;  %v472_v48 = vmul.f32 -1.442695, %v391_v46  ;;  %v474_v49 = vmul.f32 -1.442695, %v401_v47 }
 0x271   :  { %560 = vpow2.f32 %v475_v45 }
 0x272   :  { %562 = vpow2.f32 %v472_v48 }
 0x273   :  { %564 = vpow2.f32 %v474_v49 }
 0x27d   :  { %v559_v50 = vpop.eup %558 }
 0x27e   :  { %v561_v51 = vpop.eup %560  ;;  %v423_v52 = vadd.f32 1.0, %v559_v50 }
 0x27f   :  { %v563_v53 = vpop.eup %562  ;;  %v425_v54 = vadd.f32 1.0, %v561_v51 }
 0x280   :  { %v565_v55 = vpop.eup %564  ;;  %566 = vrcp.f32 %v423_v52  ;;  %v422_v56 = vadd.f32 1.0, %v563_v53 }
 0x281   :  { %568 = vrcp.f32 %v425_v54  ;;  %v424_v57 = vadd.f32 1.0, %v565_v55 }
 0x282   :  { %570 = vrcp.f32 %v422_v56 }
 0x283   :  { %572 = vrcp.f32 %v424_v57 }
 0x28d   :  { %v567_v58 = vpop.eup %566 }
 0x28e   :  { %v569_v59 = vpop.eup %568  ;;  %436 = vst.msk [vmem:[#allocation5 + $0x28] sm:$0xff] %vm240_vm4, %v567_v58 }
 0x28f   :  { %v571_v60 = vpop.eup %570  ;;  %438 = vst.msk [vmem:[#allocation5 + $0x38] sm:$0xff] %vm240_vm4, %v569_v59 }
 0x290   :  { %v573_v61 = vpop.eup %572  ;;  %435 = vst.msk [vmem:[#allocation5 + $0x20] sm:$0xff] %vm240_vm4, %v571_v60 }
 0x291   :  { %437 = vst.msk [vmem:[#allocation5 + $0x30] sm:$0xff] %vm240_vm4, %v573_v61 }
 0x292   :  { %605 = shalt.err (!%p602_p9)
}
 0x293   :  { %450 = dma.vmem_to_hbm [thread:$0]  %s445_s27, 1024, %s700_s3, [#allocation4], %s619_s15, %s619_s15, %s620_s16  }
 0x294   :  { %616 = dma.done.wait [#allocation4], 1024  }
 0x295   :  { %617 = vsyncadd [#allocation4], 4294966272 }
 0x296   :  { %454 = vsyncpa [#allocation3], 1 }
 0x297   :  { %455 = vsyncpa [#allocation4], 1 }

</bundles_post_ra>
